<compile_context>
chip_gen: v7x
topology: tpu7x:2x2x1
jax: 0.10.0
libtpu: 0.0.40
codegen_flags: <defaults>
</compile_context>

<pallas_src>
import numpy as np
import jax
import jax.numpy as jnp
from jax import lax
from jax.experimental import pallas as pl
from jax.experimental.pallas import tpu as pltpu


def _round_up(v, m):
    return -(-v // m) * m


# ---------------------------------------------------------------------------
# Init-time (static) parameter preparation — call ONCE, reuse every forward.
# The C3 connectivity table is applied by zeroing disconnected weight entries,
# which is mathematically identical to the partially-connected layer.
# ---------------------------------------------------------------------------
def prepare_c3_params(weight, bias, custom_feat):
    Cout, Cin, KH, KW = weight.shape
    mask = np.zeros((Cout, Cin), np.float32)
    for oc, ics in custom_feat.items():
        mask[oc, np.asarray(ics, dtype=np.int64)] = 1.0
    # NOTE: out-channels absent from custom_feat get an all-zero mask row and
    # become bias-only outputs (intended semantic for incomplete tables).
    w_masked = weight * jnp.asarray(mask)[:, :, None, None]
    # (K, N) with K flattened as (Cin, KH, KW), Cin slowest — this matches the
    # feature ordering emitted by lax.conv_general_dilated_patches with
    # dimension_numbers=("NCHW", "OIHW", "NHWC") used in c3_conv_pallas, and is
    # validated end-to-end against a dense-conv reference in __main__.
    w_mat = w_masked.reshape(Cout, Cin * KH * KW).T.astype(jnp.bfloat16)
    b_row = bias.astype(jnp.float32).reshape(1, Cout)
    return w_mat, b_row


def _c3_gemm_kernel(p_ref, w_ref, b_ref, o_ref):
    # One M-tile of the im2col matrix against the full masked weight matrix.
    # bf16 x bf16 -> f32 on the MXU; bias add stays f32 on the VPU (v5e-safe).
    acc = jnp.dot(p_ref[...], w_ref[...], preferred_element_type=jnp.float32)
    o_ref[...] = acc + b_ref[...]


def c3_conv_pallas(x, w_mat, b_row, kernel_size, stride, padding, *, nchw_out=False):
    """LeNet C3 partially-connected conv forward.

    x:      (B, Cin, H, W) float32, NCHW (PyTorch convention)
    w_mat:  (Cin*KH*KW, Cout) bf16 masked weight from prepare_c3_params
    b_row:  (1, Cout) f32 bias from prepare_c3_params
    Returns NHWC (B, OH, OW, Cout) by default (lane-dense, no output transpose);
    pass nchw_out=True for PyTorch-style NCHW.
    """
    if isinstance(kernel_size, int):
        kernel_size = (kernel_size, kernel_size)
    if isinstance(stride, int):
        stride = (stride, stride)
    if isinstance(padding, int):
        padding = (padding, padding)
    KH, KW = kernel_size
    sh, sw = stride
    ph, pw = padding

    B, Cin, H, W = x.shape
    K, Cout = w_mat.shape
    assert K == Cin * KH * KW, "w_mat does not match (Cin, KH, KW)"
    OH = (H + 2 * ph - KH) // sh + 1
    OW = (W + 2 * pw - KW) // sw + 1
    M = B * OH * OW
    N = Cout

    # im2col as one fused XLA op, emitted channel-last so the reshape to 2-D is
    # free.  Patch feature index = c*(KH*KW) + kh*KW + kw (Cin-major), matching
    # the weight layout built in prepare_c3_params.
    # TODO(synk): for large B/H/W fold the im2col into the kernel (keep an NHWC
    # input tile resident in VMEM and accumulate KH*KW shifted matmuls into an
    # f32 scratch) to avoid the 25x HBM read-amplification of the patch matrix.
    patches = lax.conv_general_dilated_patches(
        x.astype(jnp.bfloat16),
        filter_shape=(KH, KW),
        window_strides=(sh, sw),
        padding=[(ph, ph), (pw, pw)],
        dimension_numbers=("NCHW", "OIHW", "NHWC"),
    ).reshape(M, K)                                 # (M, K) bf16, true K (no pad)

    # --- M tiling.  K and N stay at their true sizes (block dim == full array
    # dim), so there is no host-side pad of the big operands and no post-kernel
    # N slice.
    if M <= 256:
        tm = M            # single full-M block: zero padding; per-step overhead dominates
    elif M <= 2048:
        # >=2 M-blocks so the "parallel" axis can shard across both TensorCores
        # on v7x; multiples of 16 keep the bf16 sublane packing legal.
        tm = _round_up(pl.cdiv(M, 2), 16)
    else:
        # Large M: 1024-row tiles (~86% of HBM roofline measured) amortise the
        # ~0.35us per-grid-step overhead while staying far under VMEM limits.
        tm = 1024

    Mp = _round_up(M, tm)
    if Mp != M:
        patches = jnp.pad(patches, ((0, Mp - M), (0, 0)))   # rows only, never K

    cost = pl.CostEstimate(
        flops=2 * Mp * K * N,
        transcendentals=0,
        bytes_accessed=Mp * K * 2 + K * N * 2 + N * 4 + Mp * N * 4,
    )

    # TODO(synk): if Cin*KH*KW or Cout is ever scaled up (v7x has only 64 MiB
    # VMEM), add a K grid axis ("arbitrary") with a pl.when-zeroed f32 acc
    # scratch, mark weight/bias specs pipeline_mode=pl.Buffered(1), and set
    # vmem_limit_bytes explicitly.
    out = pl.pallas_call(
        _c3_gemm_kernel,
        out_shape=jax.ShapeDtypeStruct((Mp, N), jnp.float32),
        grid_spec=pltpu.PrefetchScalarGridSpec(
            num_scalar_prefetch=0,
            grid=(Mp // tm,),
            in_specs=[
                pl.BlockSpec((tm, K), lambda i: (i, 0)),   # patches M-tile (bf16)
                pl.BlockSpec((K, N), lambda i: (0, 0)),    # full masked weight (bf16)
                pl.BlockSpec((1, N), lambda i: (0, 0)),    # bias row (f32)
            ],
            out_specs=pl.BlockSpec((tm, N), lambda i: (i, 0)),
        ),
        compiler_params=pltpu.CompilerParams(
            dimension_semantics=("parallel",)),
        cost_estimate=cost,
    )(patches, w_mat, b_row)

    if Mp != M:
        out = out[:M]
    y = out.reshape(B, OH, OW, Cout)                # NHWC, lane dim = Cout
    if nchw_out:
        y = y.transpose(0, 3, 1, 2)
    return y


if __name__ == "__main__":
    # LeNet-5 C3: 6 input maps -> 16 output maps, 5x5 kernel, stride 1, no pad.
    C3_MAP = {
        0: [0, 1, 2], 1: [1, 2, 3], 2: [2, 3, 4], 3: [3, 4, 5],
        4: [0, 4, 5], 5: [0, 1, 5],
        6: [0, 1, 2, 3], 7: [1, 2, 3, 4], 8: [2, 3, 4, 5], 9: [0, 3, 4, 5],
        10: [0, 1, 4, 5], 11: [0, 1, 2, 5], 12: [0, 1, 3, 4], 13: [1, 2, 4, 5],
        14: [0, 2, 3, 5], 15: [0, 1, 2, 3, 4, 5],
    }
    in_ch, out_ch, ksize = 6, 16, 5
    stride, padding = (1, 1), (0, 0)
    B, H, W = 2, 14, 14

    key = jax.random.PRNGKey(0)
    kx, kw, kb = jax.random.split(key, 3)
    x = jax.random.normal(kx, (B, in_ch, H, W), jnp.float32)
    weight = jax.random.normal(kw, (out_ch, in_ch, ksize, ksize), jnp.float32) * 0.1
    bias = jax.random.normal(kb, (out_ch,), jnp.float32) * 0.1

    # Static prep done once (not per forward).
    w_mat, b_row = prepare_c3_params(weight, bias, C3_MAP)

    y = c3_conv_pallas(x, w_mat, b_row, ksize, stride, padding)   # NHWC output
    y = jax.block_until_ready(y)
    assert y.shape == (B, 10, 10, out_ch)

    # Pure-JAX f32 reference (masked dense conv == partially-connected C3 conv),
    # emitted NHWC to match the kernel's output layout.  This also validates the
    # (Cin, KH, KW)-major patch-feature ordering assumption end-to-end.
    mask = np.zeros((out_ch, in_ch), np.float32)
    for oc, ics in C3_MAP.items():
        mask[oc, np.asarray(ics)] = 1.0
    w_masked = weight * jnp.asarray(mask)[:, :, None, None]
    y_ref = lax.conv_general_dilated(
        x, w_masked, window_strides=stride, padding="VALID",
        dimension_numbers=("NCHW", "OIHW", "NHWC")) + bias[None, None, None, :]
    # bf16 MXU operands vs f32 reference -> loosened tolerance (documented
    # precision contract; keep f32 operands if strict parity is required).
    np.testing.assert_allclose(np.asarray(y), np.asarray(y_ref),
                               rtol=2e-2, atol=2e-2)

    print("KERNEL_OK")
</pallas_src>

<mosaic_0001>
module attributes {stable_mosaic.version = 11 : i64} {
  func.func @_c3_gemm_kernel(%arg0: i32, %arg1: memref<200x150xbf16, #tpu.memory_space<vmem>>, %arg2: memref<150x16xbf16, #tpu.memory_space<vmem>>, %arg3: memref<1x16xf32, #tpu.memory_space<vmem>>, %arg4: memref<200x16xf32, #tpu.memory_space<vmem>>) attributes {dimension_semantics = [#tpu.dimension_semantics<parallel>], iteration_bounds = array<i64: 1>, scalar_prefetch = 0 : i64, scratch_operands = 0 : i64, tpu.core_type = #tpu.core_type<tc>, window_params = [{transform_indices = @transform_0, window_bounds = array<i64: 200, 150>}, {pipeline_mode = #tpu.pipeline_mode<synchronous>, transform_indices = @transform_1, window_bounds = array<i64: 150, 16>}, {pipeline_mode = #tpu.pipeline_mode<synchronous>, transform_indices = @transform_2, window_bounds = array<i64: 1, 16>}, {transform_indices = @transform_3, window_bounds = array<i64: 200, 16>}]} {
    %c0 = arith.constant 0 : index
    %c0_0 = arith.constant 0 : index
    %0 = vector.load %arg1[%c0, %c0_0] : memref<200x150xbf16, #tpu.memory_space<vmem>>, vector<200x150xbf16>
    %c0_1 = arith.constant 0 : index
    %c0_2 = arith.constant 0 : index
    %1 = vector.load %arg2[%c0_1, %c0_2] : memref<150x16xbf16, #tpu.memory_space<vmem>>, vector<150x16xbf16>
    %cst = arith.constant dense<0.000000e+00> : vector<200x16xf32>
    %2 = tpu.matmul %0, %1, %cst {dimension_numbers = #tpu.dot_dimension_numbers<[1], [0], [0], [1], [0, 0, 1, 1], [], []>} : vector<200x150xbf16>, vector<150x16xbf16>, vector<200x16xf32> -> vector<200x16xf32>
    %c0_3 = arith.constant 0 : index
    %c0_4 = arith.constant 0 : index
    %3 = vector.load %arg3[%c0_3, %c0_4] : memref<1x16xf32, #tpu.memory_space<vmem>>, vector<1x16xf32>
    %4 = vector.broadcast %3 : vector<1x16xf32> to vector<200x16xf32>
    %5 = arith.addf %2, %4 : vector<200x16xf32>
    %c0_5 = arith.constant 0 : index
    %c0_6 = arith.constant 0 : index
    %6 = vector.load %arg4[%c0_5, %c0_6] : memref<200x16xf32, #tpu.memory_space<vmem>>, vector<200x16xf32>
    tpu.vector_store %arg4[%c0_5, %c0_6], %5 {strides = array<i32>} : memref<200x16xf32, #tpu.memory_space<vmem>>, vector<200x16xf32>,
    return
  }
  func.func @transform_0(%arg0: i32) -> (i32, i32) {
    %c0_i32 = arith.constant 0 : i32
    %c0_i32_0 = arith.constant 0 : i32
    return %arg0, %c0_i32 : i32, i32
  }
  func.func @transform_1(%arg0: i32) -> (i32, i32) {
    %c0_i32 = arith.constant 0 : i32
    %c0_i32_0 = arith.constant 0 : i32
    %c0_i32_1 = arith.constant 0 : i32
    return %c0_i32, %c0_i32_0 : i32, i32
  }
  func.func @transform_2(%arg0: i32) -> (i32, i32) {
    %c0_i32 = arith.constant 0 : i32
    %c0_i32_0 = arith.constant 0 : i32
    %c0_i32_1 = arith.constant 0 : i32
    return %c0_i32, %c0_i32_0 : i32, i32
  }
  func.func @transform_3(%arg0: i32) -> (i32, i32) {
    %c0_i32 = arith.constant 0 : i32
    %c0_i32_0 = arith.constant 0 : i32
    return %arg0, %c0_i32 : i32, i32
  }
}

</mosaic_0001>

<bundles_post_ra>
// kernel: tpu_custom_call.1
= control target key start
LH: loop header
LB: loop body
LE: loop exit
PB: predicated region body
PF: predicated region fallthrough
CT: control target
= control target key end

     0   :  { %v566_v0 = vmov 0   ;;  %vm237_vm0 = vcmask 179200   ;;  %vm277_vm1 = vcmask 1042432   ;;  %vm417_vm2 = vcmask 130048   ;;  %s835_s1 = inlined_call_operand.vmem [shape: bf16[150,16], index: 1, kind: input, shape index: {}]   ;;  %s836_s0 = inlined_call_operand.vmem [shape: bf16[200,150], index: 0, kind: input, shape index: {}]   ;;  %s837_s2 = inlined_call_operand.vmem [shape: f32[1,16], index: 2, kind: input, shape index: {}]   ;;  %s838_s3 = inlined_call_operand.vmem [shape: f32[200,16], index: 3, kind: output, shape index: {}]  }
   0x1   :  { %281 = vmatprep.subr.bf16.mxu0 %v566_v0  ;;  %v518_v1 = vld [vmem:[%s835_s1] sm:$0xff]   ;;  %497 = vmatprep.subr.bf16.mxu1 %v566_v0  ;;  %v519_v2 = vld [vmem:[%s835_s1 + $0x8] sm:$0xff]   ;;  %v520_v3 = vld [vmem:[%s835_s1 + $0x10] sm:$0xff]  }
   0x2   :  { %282 = vmatpush1.bf16.msra.mxu0 %v518_v1  ;;  %507 = vmatpush1.bf16.msra.mxu1 %v518_v1  ;;  %v521_v4 = vld [vmem:[%s835_s1 + $0x18] sm:$0xff]   ;;  %v530_v5 = vld [vmem:[%s836_s0 + $0x4] ss:$8 sps:$4 sm:$0xff]   ;;  %v524_v9 = vld [vmem:[%s835_s1 + $0x30] sm:$0xff]  }
   0x3   :  { %283 = vmatprep.subr.bf16.mxu0 %v566_v0  ;;  %498 = vmatprep.subr.bf16.mxu1 %v566_v0  ;;  %v533_v6 = vld [vmem:[%s836_s0 + $0x74] ss:$8 sps:$4 sm:$0xff]   ;;  %v522_v7 = vld [vmem:[%s835_s1 + $0x20] sm:$0xff]   ;;  %v523_v8 = vld [vmem:[%s835_s1 + $0x28] sm:$0xff]  }
   0x4   :  { %484 = vmatprep.mubr.msk.bf16.mxu0 %vm237_vm0, %v530_v5  ;;  %491 = vmatprep.mubr.msk.bf16.mxu1 %vm237_vm0, %v533_v6  ;;  %v525_v10 = vld [vmem:[%s835_s1 + $0x38] sm:$0xff]   ;;  %v526_v11 = vld [vmem:[%s835_s1 + $0x40] sm:$0xff]   ;;  %v527_v12 = vld [vmem:[%s835_s1 + $0x48] ss:$0 sps:$4 sm:$0x77]  }
   0x5   :  { %v279_v13 = vsel %vm277_vm1, %v527_v12, 0  ;;  %v528_v14 = vld [vmem:[%s836_s0] ss:$8 sps:$4 sm:$0xff]   ;;  %v531_v15 = vld [vmem:[%s836_s0 + $0x70] ss:$8 sps:$4 sm:$0xff]  }
   0x6   :  { %284 = vmatpush1.bf16.msra.mxu0 %v519_v2  ;;  %508 = vmatpush1.bf16.msra.mxu1 %v519_v2  ;;  %v534_v16 = vld [vmem:[%s836_s0 + $0x14] ss:$8 sps:$4 sm:$0xff]   ;;  %v537_v17 = vld [vmem:[%s836_s0 + $0x84] ss:$8 sps:$4 sm:$0xff]   ;;  %v536_v18 = vld [vmem:[%s836_s0 + $0x10] ss:$8 sps:$4 sm:$0xff]  }
   0x7   :  { %285 = vmatprep.subr.bf16.mxu0 %v566_v0  ;;  %499 = vmatprep.subr.bf16.mxu1 %v566_v0  ;;  %v541_v19 = vld [vmem:[%s836_s0 + $0x80] ss:$8 sps:$4 sm:$0xff]   ;;  %v539_v20 = vld [vmem:[%s836_s0 + $0x24] ss:$8 sps:$4 sm:$0xff]   ;;  %v543_v21 = vld [vmem:[%s836_s0 + $0x94] ss:$8 sps:$4 sm:$0xff]  }
   0x8   :  { %v542_v22 = vld [vmem:[%s836_s0 + $0x20] ss:$8 sps:$4 sm:$0xff]   ;;  %v547_v23 = vld [vmem:[%s836_s0 + $0x90] ss:$8 sps:$4 sm:$0xff]   ;;  %v545_v24 = vld [vmem:[%s836_s0 + $0x34] ss:$8 sps:$4 sm:$0xff]  }
   0x9   :  { %v549_v25 = vld [vmem:[%s836_s0 + $0xa4] ss:$8 sps:$4 sm:$0xff]   ;;  %v548_v26 = vld [vmem:[%s836_s0 + $0x30] ss:$8 sps:$4 sm:$0xff]   ;;  %v553_v27 = vld [vmem:[%s836_s0 + $0xa0] ss:$8 sps:$4 sm:$0xff]  }
   0xa   :  { %286 = vmatpush1.bf16.msra.mxu0 %v520_v3  ;;  %509 = vmatpush1.bf16.msra.mxu1 %v520_v3  ;;  %v551_v28 = vld [vmem:[%s836_s0 + $0x44] ss:$8 sps:$4 sm:$0xff]   ;;  %v555_v29 = vld [vmem:[%s836_s0 + $0xb4] ss:$8 sps:$4 sm:$0xff]   ;;  %v554_v31 = vld [vmem:[%s836_s0 + $0x40] ss:$8 sps:$4 sm:$0xff]  }
   0xb   :  { %287 = vmatprep.subr.bf16.mxu0 %v566_v0  ;;  %500 = vmatprep.subr.bf16.mxu1 %v566_v0  ;;  %v39_v30 = vld [vmem:[%s836_s0 + $0xc0] sm:$0xff]  ;;  %v559_v32 = vld [vmem:[%s836_s0 + $0xb0] ss:$8 sps:$4 sm:$0xff]   ;;  %v557_v33 = vld [vmem:[%s836_s0 + $0x54] ss:$8 sps:$4 sm:$0xff]  }
   0xc   :  { %v473_v34 = vcombine.high %v39_v30, %v39_v30  ;;  %v560_v35 = vld [vmem:[%s836_s0 + $0x50] ss:$8 sps:$4 sm:$0xff]   ;;  %v472_v36 = vcombine.low %v39_v30, %v39_v30  ;;  %v562_v37 = vld [vmem:[%s836_s0 + $0x64] ss:$8 sps:$4 sm:$0xff]   ;;  %v565_v38 = vld [vmem:[%s836_s0 + $0x60] ss:$8 sps:$4 sm:$0xff]  }
   0xd   :  { %v708_v39 = vld [vmem:[%s837_s2] ss:$0 sm:$0xff] }
   0xe   :  { %288 = vmatpush1.bf16.msra.mxu0 %v521_v4  ;;  %510 = vmatpush1.bf16.msra.mxu1 %v521_v4 }
   0xf   :  { %289 = vmatprep.subr.bf16.mxu0 %v566_v0  ;;  %501 = vmatprep.subr.bf16.mxu1 %v566_v0 }
  0x12   :  { %290 = vmatpush1.bf16.msra.mxu0 %v522_v7  ;;  %511 = vmatpush1.bf16.msra.mxu1 %v522_v7 }
  0x13   :  { %291 = vmatprep.subr.bf16.mxu0 %v566_v0  ;;  %502 = vmatprep.subr.bf16.mxu1 %v566_v0 }
  0x16   :  { %292 = vmatpush1.bf16.msra.mxu0 %v523_v8  ;;  %512 = vmatpush1.bf16.msra.mxu1 %v523_v8 }
  0x17   :  { %293 = vmatprep.subr.bf16.mxu0 %v566_v0  ;;  %503 = vmatprep.subr.bf16.mxu1 %v566_v0 }
  0x1a   :  { %294 = vmatpush1.bf16.msra.mxu0 %v524_v9  ;;  %513 = vmatpush1.bf16.msra.mxu1 %v524_v9 }
  0x1b   :  { %295 = vmatprep.subr.bf16.mxu0 %v566_v0  ;;  %504 = vmatprep.subr.bf16.mxu1 %v566_v0 }
  0x1e   :  { %296 = vmatpush1.bf16.msra.mxu0 %v525_v10  ;;  %514 = vmatpush1.bf16.msra.mxu1 %v525_v10 }
  0x1f   :  { %297 = vmatprep.subr.bf16.mxu0 %v566_v0  ;;  %505 = vmatprep.subr.bf16.mxu1 %v566_v0 }
  0x22   :  { %298 = vmatpush1.bf16.msra.mxu0 %v526_v11  ;;  %515 = vmatpush1.bf16.msra.mxu1 %v526_v11 }
  0x23   :  { %299 = vmatprep.subr.bf16.mxu0 %v566_v0  ;;  %506 = vmatprep.subr.bf16.mxu1 %v566_v0 }
  0x26   :  { %300 = vmatpush1.bf16.msra.mxu0 %v279_v13  ;;  %516 = vmatpush1.bf16.msra.mxu1 %v279_v13 }
  0x29   :  { %314 = vmatmul.mubr.bf16.vlgmr.msra.gmra.mrb[0].mxu0 %v528_v14  ;;  %370 = vmatmul.mubr.bf16.vlgmr.msra.gmra.mrb[0].mxu1 %v531_v15 }
  0x2a   :  { %485 = vmatprep.mubr.msk.bf16.mxu0 %vm237_vm0, %v534_v16  ;;  %492 = vmatprep.mubr.msk.bf16.mxu1 %vm237_vm0, %v537_v17 }
  0x31   :  { %322 = vmatmul.mubr.bf16.gmra.mrb[4].mxu0 %v536_v18  ;;  %378 = vmatmul.mubr.bf16.gmra.mrb[4].mxu1 %v541_v19 }
  0x32   :  { %486 = vmatprep.mubr.msk.bf16.mxu0 %vm237_vm0, %v539_v20  ;;  %493 = vmatprep.mubr.msk.bf16.mxu1 %vm237_vm0, %v543_v21 }
  0x39   :  { %330 = vmatmul.mubr.bf16.gmra.mrb[8].mxu0 %v542_v22  ;;  %386 = vmatmul.mubr.bf16.gmra.mrb[8].mxu1 %v547_v23 }
  0x3a   :  { %487 = vmatprep.mubr.msk.bf16.mxu0 %vm237_vm0, %v545_v24  ;;  %494 = vmatprep.mubr.msk.bf16.mxu1 %vm237_vm0, %v549_v25 }
  0x41   :  { %338 = vmatmul.mubr.bf16.gmra.mrb[12].mxu0 %v548_v26  ;;  %394 = vmatmul.mubr.bf16.gmra.mrb[12].mxu1 %v553_v27 }
  0x42   :  { %488 = vmatprep.mubr.msk.bf16.mxu0 %vm237_vm0, %v551_v28  ;;  %495 = vmatprep.mubr.msk.bf16.mxu1 %vm237_vm0, %v555_v29 }
  0x49   :  { %346 = vmatmul.mubr.bf16.gmra.mrb[16].mxu0 %v554_v31  ;;  %402 = vmatmul.mubr.bf16.gmra.mrb[16].mxu1 %v559_v32 }
  0x4a   :  { %489 = vmatprep.mubr.msk.bf16.mxu0 %vm237_vm0, %v557_v33  ;;  %496 = vmatprep.mubr.msk.bf16.mxu1 %vm237_vm0, %v473_v34 }
  0x51   :  { %354 = vmatmul.mubr.bf16.gmra.mrb[20].mxu0 %v560_v35  ;;  %410 = vmatmul.mubr.bf16.gmra.mrb[20].mxu1 %v472_v36 }
  0x52   :  { %490 = vmatprep.mubr.msk.bf16.mxu0 %vm237_vm0, %v562_v37 }
  0x59   :  { %362 = vmatmul.mubr.bf16.gmra.mrb[24].mxu0 %v565_v38 }
  0xfc   :  { %v315_v40 = vpop.f32.mrb[0].mxu0  ;;  %v371_v41 = vpop.f32.mrb[0].mxu1 }
  0xfd   :  { %v316_v42 = vadd.f32 %v708_v39, %v315_v40  ;;  %v317_v43 = vpop.f32.mrb[1].mxu0  ;;  %v372_v44 = vadd.f32 %v708_v39, %v371_v41  ;;  %v373_v45 = vpop.f32.mrb[1].mxu1 }
  0xfe   :  { %v318_v46 = vpop.f32.mrb[2].mxu0  ;;  %v374_v47 = vpop.f32.mrb[2].mxu1 }
  0xff   :  { %418 = vst.msk [vmem:[%s838_s3] sm:$0xff] %vm417_vm2, %v316_v42  ;;  %v319_v48 = vadd.f32 %v708_v39, %v318_v46  ;;  %v320_v49 = vpop.f32.mrb[3].mxu0  ;;  %432 = vst.msk [vmem:[%s838_s3 + $0x70] sm:$0xff] %vm417_vm2, %v372_v44  ;;  %v375_v50 = vadd.f32 %v708_v39, %v374_v47  ;;  %v376_v51 = vpop.f32.mrb[3].mxu1 }
 0x101   :  { %419 = vst.msk [vmem:[%s838_s3 + $0x8] sm:$0xff] %vm417_vm2, %v319_v48  ;;  %433 = vst.msk [vmem:[%s838_s3 + $0x78] sm:$0xff] %vm417_vm2, %v375_v50 }
 0x104   :  { %v323_v52 = vpop.f32.mrb[4].mxu0  ;;  %v379_v53 = vpop.f32.mrb[4].mxu1 }
 0x105   :  { %v324_v54 = vadd.f32 %v708_v39, %v323_v52  ;;  %v325_v55 = vpop.f32.mrb[5].mxu0  ;;  %v380_v56 = vadd.f32 %v708_v39, %v379_v53  ;;  %v381_v57 = vpop.f32.mrb[5].mxu1 }
 0x106   :  { %v326_v58 = vpop.f32.mrb[6].mxu0  ;;  %v382_v59 = vpop.f32.mrb[6].mxu1 }
 0x107   :  { %420 = vst.msk [vmem:[%s838_s3 + $0x10] sm:$0xff] %vm417_vm2, %v324_v54  ;;  %v327_v60 = vadd.f32 %v708_v39, %v326_v58  ;;  %v328_v61 = vpop.f32.mrb[7].mxu0  ;;  %434 = vst.msk [vmem:[%s838_s3 + $0x80] sm:$0xff] %vm417_vm2, %v380_v56  ;;  %v383_v62 = vadd.f32 %v708_v39, %v382_v59  ;;  %v384_v63 = vpop.f32.mrb[7].mxu1 }
 0x109   :  { %421 = vst.msk [vmem:[%s838_s3 + $0x18] sm:$0xff] %vm417_vm2, %v327_v60  ;;  %435 = vst.msk [vmem:[%s838_s3 + $0x88] sm:$0xff] %vm417_vm2, %v383_v62 }
 0x10c   :  { %v331_v0 = vpop.f32.mrb[8].mxu0  ;;  %v387_v1 = vpop.f32.mrb[8].mxu1 }
 0x10d   :  { %v332_v2 = vadd.f32 %v708_v39, %v331_v0  ;;  %v333_v3 = vpop.f32.mrb[9].mxu0  ;;  %v388_v4 = vadd.f32 %v708_v39, %v387_v1  ;;  %v389_v5 = vpop.f32.mrb[9].mxu1 }
 0x10e   :  { %v334_v6 = vpop.f32.mrb[10].mxu0  ;;  %v390_v7 = vpop.f32.mrb[10].mxu1 }
 0x10f   :  { %422 = vst.msk [vmem:[%s838_s3 + $0x20] sm:$0xff] %vm417_vm2, %v332_v2  ;;  %v335_v8 = vadd.f32 %v708_v39, %v334_v6  ;;  %v336_v9 = vpop.f32.mrb[11].mxu0  ;;  %436 = vst.msk [vmem:[%s838_s3 + $0x90] sm:$0xff] %vm417_vm2, %v388_v4  ;;  %v391_v10 = vadd.f32 %v708_v39, %v390_v7  ;;  %v392_v11 = vpop.f32.mrb[11].mxu1 }
 0x111   :  { %423 = vst.msk [vmem:[%s838_s3 + $0x28] sm:$0xff] %vm417_vm2, %v335_v8  ;;  %437 = vst.msk [vmem:[%s838_s3 + $0x98] sm:$0xff] %vm417_vm2, %v391_v10 }
 0x114   :  { %v339_v12 = vpop.f32.mrb[12].mxu0  ;;  %v395_v13 = vpop.f32.mrb[12].mxu1 }
 0x115   :  { %v340_v14 = vadd.f32 %v708_v39, %v339_v12  ;;  %v341_v15 = vpop.f32.mrb[13].mxu0  ;;  %v396_v16 = vadd.f32 %v708_v39, %v395_v13  ;;  %v397_v17 = vpop.f32.mrb[13].mxu1 }
 0x116   :  { %v342_v18 = vpop.f32.mrb[14].mxu0  ;;  %v398_v19 = vpop.f32.mrb[14].mxu1 }
 0x117   :  { %424 = vst.msk [vmem:[%s838_s3 + $0x30] sm:$0xff] %vm417_vm2, %v340_v14  ;;  %v343_v20 = vadd.f32 %v708_v39, %v342_v18  ;;  %v344_v21 = vpop.f32.mrb[15].mxu0  ;;  %438 = vst.msk [vmem:[%s838_s3 + $0xa0] sm:$0xff] %vm417_vm2, %v396_v16  ;;  %v399_v22 = vadd.f32 %v708_v39, %v398_v19  ;;  %v400_v23 = vpop.f32.mrb[15].mxu1 }
 0x119   :  { %425 = vst.msk [vmem:[%s838_s3 + $0x38] sm:$0xff] %vm417_vm2, %v343_v20  ;;  %439 = vst.msk [vmem:[%s838_s3 + $0xa8] sm:$0xff] %vm417_vm2, %v399_v22 }
 0x11c   :  { %v347_v24 = vpop.f32.mrb[16].mxu0  ;;  %v403_v25 = vpop.f32.mrb[16].mxu1 }
 0x11d   :  { %v348_v26 = vadd.f32 %v708_v39, %v347_v24  ;;  %v349_v27 = vpop.f32.mrb[17].mxu0  ;;  %v404_v28 = vadd.f32 %v708_v39, %v403_v25  ;;  %v405_v29 = vpop.f32.mrb[17].mxu1 }
 0x11e   :  { %v350_v30 = vpop.f32.mrb[18].mxu0  ;;  %v406_v31 = vpop.f32.mrb[18].mxu1 }
 0x11f   :  { %426 = vst.msk [vmem:[%s838_s3 + $0x40] sm:$0xff] %vm417_vm2, %v348_v26  ;;  %v351_v32 = vadd.f32 %v708_v39, %v350_v30  ;;  %v352_v33 = vpop.f32.mrb[19].mxu0  ;;  %440 = vst.msk [vmem:[%s838_s3 + $0xb0] sm:$0xff] %vm417_vm2, %v404_v28  ;;  %v407_v34 = vadd.f32 %v708_v39, %v406_v31  ;;  %v408_v35 = vpop.f32.mrb[19].mxu1 }
 0x121   :  { %427 = vst.msk [vmem:[%s838_s3 + $0x48] sm:$0xff] %vm417_vm2, %v351_v32  ;;  %441 = vst.msk [vmem:[%s838_s3 + $0xb8] sm:$0xff] %vm417_vm2, %v407_v34 }
 0x124   :  { %v355_v36 = vpop.f32.mrb[20].mxu0  ;;  %v411_v37 = vpop.f32.mrb[20].mxu1 }
 0x125   :  { %v356_v38 = vadd.f32 %v708_v39, %v355_v36  ;;  %v357_v40 = vpop.f32.mrb[21].mxu0  ;;  %v412_v41 = vadd.f32 %v708_v39, %v411_v37  ;;  %v413_v42 = vpop.f32.mrb[21].mxu1 }
 0x126   :  { %v358_v43 = vpop.f32.mrb[22].mxu0  ;;  %v414_v44 = vpop.f32.mrb[22].mxu1 }
 0x127   :  { %428 = vst.msk [vmem:[%s838_s3 + $0x50] sm:$0xff] %vm417_vm2, %v356_v38  ;;  %v359_v45 = vadd.f32 %v708_v39, %v358_v43  ;;  %v360_v46 = vpop.f32.mrb[23].mxu0  ;;  %442 = vst.msk [vmem:[%s838_s3 + $0xc0] sm:$0xff] %vm417_vm2, %v412_v41  ;;  %v415_v47 = vpop.f32.mrb[23].mxu1 }
 0x129   :  { %429 = vst.msk [vmem:[%s838_s3 + $0x58] sm:$0xff] %vm417_vm2, %v359_v45 }
 0x12c   :  { %v363_v48 = vpop.f32.mrb[24].mxu0 }
 0x12d   :  { %v364_v49 = vadd.f32 %v708_v39, %v363_v48  ;;  %v365_v50 = vpop.f32.mrb[25].mxu0 }
 0x12e   :  { %v366_v51 = vpop.f32.mrb[26].mxu0 }
 0x12f   :  { %430 = vst.msk [vmem:[%s838_s3 + $0x60] sm:$0xff] %vm417_vm2, %v364_v49  ;;  %v367_v52 = vadd.f32 %v708_v39, %v366_v51  ;;  %v368_v53 = vpop.f32.mrb[27].mxu0 }
 0x131   :  { %431 = vst.msk [vmem:[%s838_s3 + $0x68] sm:$0xff] %vm417_vm2, %v367_v52 }

</bundles_post_ra>
